<compile_context>
chip_gen: v7x
topology: tpu7x:2x2x1
jax: 0.10.0
libtpu: 0.0.40
codegen_flags: <defaults>
</compile_context>

<pallas_src>
import functools

import jax
import jax.numpy as jnp
from jax.experimental import pallas as pl
from jax.experimental.pallas import tpu as pltpu

EPS = 1e-5  # same eps as FrozenBatchNorm2d.forward


def _round_up(x, m):
    return (x + m - 1) // m * m


def _pick_tile(dim, candidates):
    for c in candidates:
        if c <= dim and dim % c == 0:
            return c
    return dim


@functools.lru_cache(maxsize=None)
def _budgets():
    """(scoped vmem limit, direct-conv working-set budget), generation-aware."""
    try:
        cap = int(pltpu.get_tpu_info().vmem_capacity_bytes)
    except Exception:  # interpret mode / non-TPU host: assume v7x-sized VMEM
        cap = 64 * 1024 * 1024
    vmem_limit = min(int(cap * 0.75), 100 * 1024 * 1024)
    direct_budget = min(int(cap * 0.45), 56 * 1024 * 1024)
    return vmem_limit, direct_budget


# ----------------------------------------------------------------------------
# Pallas kernels
# ----------------------------------------------------------------------------
def _mm_full_kernel(a_ref, b_ref, bias_ref, o_ref, *, relu):
    # Whole (K, N) weight resident; one MXU pass per M tile, fused epilogue.
    out = jnp.dot(a_ref[...], b_ref[...], preferred_element_type=jnp.float32)
    out = out + bias_ref[...]
    if relu:
        out = jnp.maximum(out, 0.0)
    o_ref[...] = out.astype(o_ref.dtype)


def _mm_full_res_kernel(a_ref, b_ref, bias_ref, res_ref, o_ref):
    # Bottleneck tail: relu(bn3(conv3(x)) + identity) fused into the epilogue.
    out = jnp.dot(a_ref[...], b_ref[...], preferred_element_type=jnp.float32)
    out = out + bias_ref[...] + res_ref[...].astype(jnp.float32)
    o_ref[...] = jnp.maximum(out, 0.0).astype(o_ref.dtype)


def _mm_tiled_kernel(a_ref, b_ref, bias_ref, o_ref, acc_ref, *, relu):
    # (M, N, K)-tiled fallback for weights too large to keep resident.
    @pl.when(pl.program_id(2) == 0)
    def _():
        acc_ref[...] = jnp.zeros_like(acc_ref)

    acc_ref[...] += jnp.dot(a_ref[...], b_ref[...],
                            preferred_element_type=jnp.float32)

    @pl.when(pl.program_id(2) == pl.num_programs(2) - 1)
    def _():
        out = acc_ref[...] + bias_ref[...]
        if relu:
            out = jnp.maximum(out, 0.0)
        o_ref[...] = out.astype(o_ref.dtype)


def _mm_tiled_res_kernel(a_ref, b_ref, bias_ref, res_ref, o_ref, acc_ref):
    @pl.when(pl.program_id(2) == 0)
    def _():
        acc_ref[...] = jnp.zeros_like(acc_ref)

    acc_ref[...] += jnp.dot(a_ref[...], b_ref[...],
                            preferred_element_type=jnp.float32)

    @pl.when(pl.program_id(2) == pl.num_programs(2) - 1)
    def _():
        out = acc_ref[...] + bias_ref[...] + res_ref[...].astype(jnp.float32)
        o_ref[...] = jnp.maximum(out, 0.0).astype(o_ref.dtype)


def _direct_conv_kernel(x_ref, w_ref, bias_ref, o_ref, acc_ref, *,
                        offsets, cin, length, relu):
    # Direct stride-1 KxK conv on a flattened (Hp*Wp, Cin) padded image.
    # One grid step = one row strip of the "wide" output (Wp columns, the
    # invalid trailing columns are discarded by the wrapper); the taps are
    # accumulated into a (length, tn) f32 VMEM scratch.
    base = pl.program_id(2) * length
    for t, off in enumerate(offsets):
        a = x_ref[pl.ds(base + off, length), :]
        wt = w_ref[pl.ds(t * cin, cin), :]
        p = jnp.dot(a, wt, preferred_element_type=jnp.float32)
        if t == 0:
            acc_ref[...] = p
        else:
            acc_ref[...] += p
    out = acc_ref[...] + bias_ref[...]
    if relu:
        out = jnp.maximum(out, 0.0)
    o_ref[...] = out.astype(o_ref.dtype)


def _maxpool_kernel(xm_ref, xh_ref, o_ref, *, rows, wo, c):
    # MaxPool2d(3, stride=2, pad=1), one output-row strip per grid step.
    # Input arrives in a paired-column layout (n, 2*ho+2, wo+1, 2c) so that the
    # stride-2 column access becomes a static lane slice, and the even/odd row
    # split is a leading-dim reshape.  xh_ref carries the 2-row bottom halo.
    v = xm_ref[...]                                   # (2*rows, wo+1, 2c)
    hl = xh_ref[...]                                  # (2,      wo+1, 2c)
    vr = v.reshape(rows, 2, wo + 1, 2 * c)
    ev = vr[:, 0]                                     # padded rows 2i
    od = vr[:, 1]                                     # padded rows 2i+1
    ev_all = jnp.concatenate([ev, hl[0:1]], axis=0)   # padded rows 0,2,..,2R
    rmax = jnp.maximum(jnp.maximum(ev_all[:rows], od), ev_all[1:rows + 1])
    left = rmax[:, 0:wo, 0:c]                         # col 2j
    mid = rmax[:, 0:wo, c:2 * c]                      # col 2j+1
    right = rmax[:, 1:wo + 1, 0:c]                    # col 2j+2
    o_ref[...] = jnp.maximum(jnp.maximum(left, mid), right).astype(o_ref.dtype)


# ----------------------------------------------------------------------------
# Pallas-call wrappers
# ----------------------------------------------------------------------------
def _matmul_bias(a, b, bias, relu, residual=None):
    """matmul + fused BN bias (+ReLU / +residual-ReLU) with M zero-padding."""
    m, k = a.shape
    n = b.shape[1]
    a = a.astype(jnp.bfloat16)
    b = b.astype(jnp.bfloat16)
    bias = bias.reshape(1, n).astype(jnp.float32)
    if residual is not None:
        residual = residual.astype(jnp.bfloat16)
    vmem_limit, _ = _budgets()

    tm0 = min(512, _round_up(m, 8))
    tm_full = None
    for tm in (tm0, 256, 128, 64):
        if tm > tm0:
            continue
        est = (2 * k * n * 2 + n * 4
               + 2 * tm * k * 2
               + (4 if residual is not None else 2) * tm * n * 2
               + 2 * tm * n * 4)
        if est <= int(vmem_limit * 0.6):
            tm_full = tm
            break

    if tm_full is not None:
        # Single-K-block path: full (K, N) weight resident, A streamed once.
        tm = tm_full
        m_pad = _round_up(m, tm)
        a_p = a if m_pad == m else jnp.pad(a, ((0, m_pad - m), (0, 0)))
        args = [a_p, b, bias]
        in_specs = [
            pl.BlockSpec((tm, k), lambda i: (i, 0)),
            pl.BlockSpec((k, n), lambda i: (0, 0)),
            pl.BlockSpec((1, n), lambda i: (0, 0)),
        ]
        if residual is None:
            kern = functools.partial(_mm_full_kernel, relu=relu)
        else:
            r_p = (residual if m_pad == m
                   else jnp.pad(residual, ((0, m_pad - m), (0, 0))))
            args.append(r_p)
            in_specs.append(pl.BlockSpec((tm, n), lambda i: (i, 0)))
            kern = _mm_full_res_kernel
        out = pl.pallas_call(
            kern,
            out_shape=jax.ShapeDtypeStruct((m_pad, n), jnp.bfloat16),
            grid_spec=pltpu.PrefetchScalarGridSpec(
                num_scalar_prefetch=0,
                grid=(m_pad // tm,),
                in_specs=in_specs,
                out_specs=pl.BlockSpec((tm, n), lambda i: (i, 0)),
            ),
            compiler_params=pltpu.CompilerParams(
                dimension_semantics=("parallel",),
                vmem_limit_bytes=vmem_limit),
            cost_estimate=pl.CostEstimate(
                flops=2 * m_pad * n * k, transcendentals=0,
                bytes_accessed=2 * (m_pad * k + k * n + m_pad * n)),
        )(*args)
        return out if m_pad == m else out[:m]

    # (M, N, K)-tiled fallback (never hit by ResNet-50 shapes).
    tm = tm0
    m_pad = _round_up(m, tm)
    tn = _pick_tile(n, (256, 128))
    tk = _pick_tile(k, (512, 256, 128))
    a_p = a if m_pad == m else jnp.pad(a, ((0, m_pad - m), (0, 0)))
    in_specs = [
        pl.BlockSpec((tm, tk), lambda i, j, kk: (i, kk)),
        pl.BlockSpec((tk, tn), lambda i, j, kk: (kk, j)),
        pl.BlockSpec((1, tn), lambda i, j, kk: (0, j)),
    ]
    args = [a_p, b, bias]
    if residual is None:
        kern = functools.partial(_mm_tiled_kernel, relu=relu)
    else:
        r_p = (residual if m_pad == m
               else jnp.pad(residual, ((0, m_pad - m), (0, 0))))
        in_specs.append(pl.BlockSpec((tm, tn), lambda i, j, kk: (i, j)))
        args.append(r_p)
        kern = _mm_tiled_res_kernel
    out = pl.pallas_call(
        kern,
        out_shape=jax.ShapeDtypeStruct((m_pad, n), jnp.bfloat16),
        grid_spec=pltpu.PrefetchScalarGridSpec(
            num_scalar_prefetch=0,
            grid=(m_pad // tm, n // tn, k // tk),
            in_specs=in_specs,
            out_specs=pl.BlockSpec((tm, tn), lambda i, j, kk: (i, j)),
            scratch_shapes=[pltpu.VMEM((tm, tn), jnp.float32)],
        ),
        compiler_params=pltpu.CompilerParams(
            dimension_semantics=("parallel", "parallel", "arbitrary"),
            vmem_limit_bytes=vmem_limit),
        cost_estimate=pl.CostEstimate(
            flops=2 * m_pad * n * k, transcendentals=0,
            bytes_accessed=2 * (m_pad * k + k * n + m_pad * n)),
    )(*args)
    return out if m_pad == m else out[:m]


def _direct_conv_plan(h, w_in, cin, kh, kw, cout, pads, dil):
    """Row-strip / cout-tile plan for the direct conv; None if it won't fit."""
    pt, pb, plft, pr = pads
    wp = w_in + plft + pr
    hp = h + pt + pb + 1          # +1 zero row keeps every tap window in-bounds
    ho = h + pt + pb - dil * (kh - 1)
    wo = w_in + plft + pr - dil * (kw - 1)
    if ho <= 0 or wo <= 0:
        return None
    flat = hp * wp
    tn = _pick_tile(cout, (256, 128)) if cout % 128 == 0 else cout
    _, direct_budget = _budgets()
    for rr in range(ho, 0, -1):                     # largest strip that fits
        if ho % rr:
            continue
        if rr != ho and (rr * wp) % 8:              # sublane-aligned out block
            continue
        length = rr * wp
        est = (2 * flat * cin * 2                   # padded image (bf16, 2 buf)
               + 2 * kh * kw * cin * tn * 2         # weights
               + 2 * length * tn * 2                # output strips
               + 3 * length * tn * 4                # f32 scratch + temporaries
               + (1 << 14))
        if est <= direct_budget:
            return rr, tn, ho, wo, hp, wp
    return None


def _conv_direct(x, wf, bias, pads, dil, relu, plan):
    """Stride-1 KxK conv without im2col (padded image resident in VMEM)."""
    n, h, w_in, cin = x.shape
    kh, kw, _, cout = wf.shape
    pt, pb, plft, pr = pads
    rr, tn, ho, wo, hp, wp = plan
    flat = hp * wp
    length = rr * wp

    xp = jnp.pad(x, ((0, 0), (pt, pb + 1), (plft, pr), (0, 0)))
    xp = xp.reshape(n, flat, cin).astype(jnp.bfloat16)
    w2d = wf.reshape(kh * kw * cin, cout).astype(jnp.bfloat16)
    offsets = tuple(ky * dil * wp + kx * dil
                    for ky in range(kh) for kx in range(kw))
    kern = functools.partial(_direct_conv_kernel, offsets=offsets, cin=cin,
                             length=length, relu=relu)
    vmem_limit, _ = _budgets()
    out_wide = pl.pallas_call(
        kern,
        out_shape=jax.ShapeDtypeStruct((n, ho * wp, cout), jnp.bfloat16),
        grid_spec=pltpu.PrefetchScalarGridSpec(
            num_scalar_prefetch=0,
            grid=(n, cout // tn, ho // rr),
            in_specs=[
                pl.BlockSpec((None, flat, cin), lambda b, j, s: (b, 0, 0)),
                pl.BlockSpec((kh * kw * cin, tn), lambda b, j, s: (0, j)),
                pl.BlockSpec((1, tn), lambda b, j, s: (0, j)),
            ],
            out_specs=pl.BlockSpec((None, length, tn),
                                   lambda b, j, s: (b, s, j)),
            scratch_shapes=[pltpu.VMEM((length, tn), jnp.float32)],
        ),
        compiler_params=pltpu.CompilerParams(
            dimension_semantics=("parallel", "parallel", "arbitrary"),
            vmem_limit_bytes=vmem_limit),
        cost_estimate=pl.CostEstimate(
            flops=2 * n * ho * wp * cin * cout * kh * kw, transcendentals=0,
            bytes_accessed=2 * (n * flat * cin + kh * kw * cin * cout
                                + n * ho * wp * cout)),
    )(xp, w2d, bias.astype(jnp.float32))
    # TODO(synk): write only the wo valid columns per row (lane-packed store)
    # instead of slicing the (wp - wo) wide-row overhang afterwards.
    return out_wide.reshape(n, ho, wp, cout)[:, :, :wo, :]


def max_pool_3x3_s2(x):
    """MaxPool2d(kernel_size=3, stride=2, padding=1) on NHWC, row-strip tiled."""
    n, h, w, c = x.shape
    ho = (h - 1) // 2 + 1
    wo = (w - 1) // 2 + 1
    pad_b = 2 * ho + 1 - h
    pad_r = 2 * wo + 1 - w
    xp = jnp.pad(x, ((0, 0), (1, pad_b), (1, pad_r), (0, 0)),
                 constant_values=-jnp.inf)
    hp = 2 * ho + 2
    # Pair adjacent columns into channels so stride-2 column access is a
    # static lane slice in the kernel (no strided ref indexing).
    xg = xp.reshape(n, hp, wo + 1, 2 * c)

    rows = 1
    for cand in range(min(ho, 64), 0, -1):
        if ho % cand == 0 and (2 * cand) * (wo + 1) * (2 * c) * 2 * 2 <= 8 << 20:
            rows = cand
            break
    vmem_limit, _ = _budgets()
    kern = functools.partial(_maxpool_kernel, rows=rows, wo=wo, c=c)
    return pl.pallas_call(
        kern,
        out_shape=jax.ShapeDtypeStruct((n, ho, wo, c), x.dtype),
        grid_spec=pltpu.PrefetchScalarGridSpec(
            num_scalar_prefetch=0,
            grid=(n, ho // rows),
            in_specs=[
                pl.BlockSpec((None, 2 * rows, wo + 1, 2 * c),
                             lambda b, r: (b, r, 0, 0)),
                # 2-row bottom halo of the same array, addressed per strip.
                pl.BlockSpec((None, 2, wo + 1, 2 * c),
                             lambda b, r: (b, rows * (r + 1), 0, 0)),
            ],
            out_specs=pl.BlockSpec((None, rows, wo, c),
                                   lambda b, r: (b, r, 0, 0)),
        ),
        compiler_params=pltpu.CompilerParams(
            dimension_semantics=("parallel", "arbitrary"),
            vmem_limit_bytes=vmem_limit),
    )(xg, xg)


# ----------------------------------------------------------------------------
# JAX glue: space-to-depth rewrite of strided convs, im2col fallback, dispatch
# ----------------------------------------------------------------------------
def _space_to_depth(x):
    n, h, w, c = x.shape
    he, we = h + (h % 2), w + (w % 2)
    if (he, we) != (h, w):
        x = jnp.pad(x, ((0, 0), (0, he - h), (0, we - w), (0, 0)))
    x = x.reshape(n, he // 2, 2, we // 2, 2, c)
    return x.transpose(0, 1, 3, 2, 4, 5).reshape(n, he // 2, we // 2, 4 * c)


def _s2d_weight(wf, pad):
    """Rewrite a stride-2 (kh, kw) conv weight as a stride-1 conv over the
    space-to-depth(2) input layout.  Returns (w2, (pt, pb, pl, pr))."""
    kh, kw, cin, cout = wf.shape

    def tap(kk):
        d = kk - pad
        par = d % 2
        return (d - par) // 2, par

    offs_y = [tap(k)[0] for k in range(kh)]
    offs_x = [tap(k)[0] for k in range(kw)]
    pt, pb = -min(offs_y), max(offs_y)
    plft, pr = -min(offs_x), max(offs_x)
    w2 = jnp.zeros((pt + pb + 1, plft + pr + 1, 4, cin, cout), wf.dtype)
    for ky in range(kh):
        oy, py = tap(ky)
        for kx in range(kw):
            ox, px = tap(kx)
            w2 = w2.at[oy + pt, ox + plft, py * 2 + px].set(wf[ky, kx])
    return (w2.reshape(pt + pb + 1, plft + pr + 1, 4 * cin, cout),
            (pt, pb, plft, pr))


def _extract_patches(x, kh, kw, stride, padding, dilation, pad_value=0.0):
    """x: (N, H, W, C) -> patches (N, Ho, Wo, kh*kw, C).  Fallback only."""
    n, h, w, c = x.shape
    xp = jnp.pad(x, ((0, 0), (padding, padding), (padding, padding), (0, 0)),
                 constant_values=pad_value)
    ho = (h + 2 * padding - dilation * (kh - 1) - 1) // stride + 1
    wo = (w + 2 * padding - dilation * (kw - 1) - 1) // stride + 1
    cols = []
    for ky in range(kh):
        for kx in range(kw):
            y0, x0 = ky * dilation, kx * dilation
            cols.append(xp[:, y0:y0 + stride * (ho - 1) + 1:stride,
                           x0:x0 + stride * (wo - 1) + 1:stride, :])
    return jnp.stack(cols, axis=3), ho, wo


def conv_bn(x, p, stride=1, padding=0, dilation=1, relu=True, residual=None):
    """Conv2d (no bias) + folded FrozenBatchNorm2d (+ ReLU / fused residual)."""
    wf = p["wf"]
    bias = p["bias"]
    kh, kw, cin, cout = wf.shape
    n, h, w_in, _ = x.shape

    if kh == 1 and kw == 1 and padding == 0:
        xs = x if stride == 1 else x[:, ::stride, ::stride, :]
        ho, wo = xs.shape[1], xs.shape[2]
        a = xs.reshape(n * ho * wo, cin)
        res = None if residual is None else residual.reshape(n * ho * wo, cout)
        out = _matmul_bias(a, wf.reshape(cin, cout), bias, relu, res)
        return out.reshape(n, ho, wo, cout)

    assert residual is None
    if stride == 1:
        pads = (padding, padding, padding, padding)
        plan = _direct_conv_plan(h, w_in, cin, kh, kw, cout, pads, dilation)
        if plan is not None:
            return _conv_direct(x, wf, bias, pads, dilation, relu, plan)
    elif stride == 2 and dilation == 1 and "s2d" in p:
        # stride-2 KxK conv == stride-1 conv over the space-to-depth(2) layout
        # (no 9x/12x im2col activation expansion through HBM).
        xs = _space_to_depth(x)
        w2 = p["s2d"]["wf"]
        spads = p["s2d"]["pads"]
        kh2, kw2, cin2, _ = w2.shape
        plan = _direct_conv_plan(xs.shape[1], xs.shape[2], cin2, kh2, kw2,
                                 cout, spads, 1)
        if plan is not None:
            return _conv_direct(xs, w2, bias, spads, 1, relu, plan)

    # im2col fallback: only maps too large for the direct path.
    patches, ho, wo = _extract_patches(x, kh, kw, stride, padding, dilation)
    a = patches.reshape(n * ho * wo, kh * kw * cin)
    out = _matmul_bias(a, wf.reshape(kh * kw * cin, cout), bias, relu, None)
    return out.reshape(n, ho, wo, cout)


# ----------------------------------------------------------------------------
# Parameter init (torchvision resnet50 shapes, FrozenBN, dilation in layer4)
# and one-time FrozenBN folding.
# ----------------------------------------------------------------------------
def _init_conv_bn(key, kh, kw, cin, cout):
    k1, k2, k3, k4, k5 = jax.random.split(key, 5)
    fan_in = kh * kw * cin
    return {
        "w": jax.random.normal(k1, (kh, kw, cin, cout), jnp.float32)
        * (2.0 / fan_in) ** 0.5 * 0.5,
        "gamma": 1.0 + 0.1 * jax.random.normal(k2, (cout,), jnp.float32),
        "beta": 0.1 * jax.random.normal(k3, (cout,), jnp.float32),
        "rm": 0.1 * jax.random.normal(k4, (cout,), jnp.float32),
        "rv": 1.0 + 0.1 * jax.random.uniform(k5, (cout,), jnp.float32),
    }


def init_resnet50(key, dilation=True):
    expansion = 4
    blocks_per_layer = [3, 4, 6, 3]
    planes_per_layer = [64, 128, 256, 512]
    strides = [1, 2, 2, 2]
    dilate_flags = [False, False, False, dilation]

    keys = iter(jax.random.split(key, 256))
    params = {"stem": _init_conv_bn(next(keys), 7, 7, 3, 64), "layers": []}

    inplanes = 64
    cur_dilation = 1
    for planes, blocks, stride, dilate in zip(
            planes_per_layer, blocks_per_layer, strides, dilate_flags):
        prev_dilation = cur_dilation
        if dilate:
            cur_dilation *= stride
            stride = 1
        layer = []
        for b in range(blocks):
            blk_stride = stride if b == 0 else 1
            blk_dilation = prev_dilation if b == 0 else cur_dilation
            width = planes
            blk = {
                "conv1": _init_conv_bn(next(keys), 1, 1, inplanes, width),
                "conv2": _init_conv_bn(next(keys), 3, 3, width, width),
                "conv3": _init_conv_bn(next(keys), 1, 1, width, planes * expansion),
                "stride": blk_stride,
                "dilation": blk_dilation,
                "downsample": None,
            }
            if b == 0 and (stride != 1 or inplanes != planes * expansion):
                blk["downsample"] = _init_conv_bn(
                    next(keys), 1, 1, inplanes, planes * expansion)
            layer.append(blk)
            inplanes = planes * expansion
        params["layers"].append(layer)
    return params


def fold_conv_bn(p, stride=1):
    """Fold FrozenBN scale/bias into the conv weight once (outside the
    per-forward trace); precompute the space-to-depth weight for stride 2."""
    w = p["w"]
    cout = w.shape[-1]
    scale = p["gamma"] * jax.lax.rsqrt(p["rv"] + EPS)
    bias = (p["beta"] - p["rm"] * scale).reshape(1, cout).astype(jnp.float32)
    wf = (w * scale).astype(jnp.bfloat16)
    out = {"wf": wf, "bias": bias}
    if stride == 2 and w.shape[0] > 1:
        w2, pads = _s2d_weight(wf, w.shape[0] // 2)
        out["s2d"] = {"wf": w2, "pads": pads}
    return out


def fold_resnet_params(params):
    folded = {"stem": fold_conv_bn(params["stem"], stride=2), "layers": []}
    for layer in params["layers"]:
        flayer = []
        for blk in layer:
            flayer.append({
                "conv1": fold_conv_bn(blk["conv1"]),
                "conv2": fold_conv_bn(blk["conv2"], stride=blk["stride"]),
                "conv3": fold_conv_bn(blk["conv3"]),
                "downsample": (None if blk["downsample"] is None
                               else fold_conv_bn(blk["downsample"])),
                "stride": blk["stride"],
                "dilation": blk["dilation"],
            })
        folded["layers"].append(flayer)
    return folded


# ----------------------------------------------------------------------------
# Forward pass (mirrors IntermediateLayerGetter over layer1..layer4)
# ----------------------------------------------------------------------------
def bottleneck_forward(x, blk):
    identity = x
    out = conv_bn(x, blk["conv1"], stride=1, padding=0, relu=True)
    out = conv_bn(out, blk["conv2"], stride=blk["stride"],
                  padding=blk["dilation"], dilation=blk["dilation"], relu=True)
    if blk["downsample"] is not None:
        identity = conv_bn(x, blk["downsample"], stride=blk["stride"],
                           padding=0, relu=False)
    # conv3 + bn3 + residual add + ReLU fused in one Pallas kernel.
    return conv_bn(out, blk["conv3"], stride=1, padding=0, relu=True,
                   residual=identity)


def resnet_body(params, x_nhwc):
    x = conv_bn(x_nhwc, params["stem"], stride=2, padding=3, relu=True)
    x = max_pool_3x3_s2(x)
    feats = []
    for layer in params["layers"]:
        for blk in layer:
            x = bottleneck_forward(x, blk)
        feats.append(x)          # outputs of layer1..layer4
    return feats


def _resize_mask_nearest(mask_f, out_h, out_w):
    # F.interpolate(..., size=(out_h, out_w)) default mode='nearest'
    _, h, w = mask_f.shape
    ys = (jnp.arange(out_h) * h) // out_h
    xs = (jnp.arange(out_w) * w) // out_w
    return mask_f[:, ys][:, :, xs]


def resnet_backbone_forward(params, tensors, mask):
    """tensors: (t, b, C, H, W) float32; mask: (t, b, H, W) bool.

    Returns list of 4 (features (t,b,C',H',W'), mask (t,b,H',W')) pairs,
    matching the PyTorch module's list of NestedTensors.
    """
    t, b, c, h, w = tensors.shape
    frames = tensors.reshape(t * b, c, h, w).transpose(0, 2, 3, 1)  # -> NHWC
    frames = frames.astype(jnp.bfloat16)   # bf16 activations, f32 accumulation
    pad_masks = mask.reshape(t * b, h, w)

    feats = resnet_body(params, frames)

    out = []
    for f in feats:
        tb, fh, fw, fc = f.shape
        rm = _resize_mask_nearest(pad_masks.astype(jnp.float32), fh, fw)
        rm = rm.astype(jnp.bool_)
        f_out = (f.astype(jnp.float32).transpose(0, 3, 1, 2)
                 .reshape(t, b, fc, fh, fw))
        out.append((f_out, rm.reshape(t, b, fh, fw)))
    return out


# ----------------------------------------------------------------------------
if __name__ == "__main__":
    key = jax.random.PRNGKey(0)
    kp, kx, km, k1, k2, k3, k4 = jax.random.split(key, 7)
    dn = ("NHWC", "HWIO", "NHWC")

    # ---- small self-checks of the Pallas kernels against XLA references ----
    xt = jax.random.normal(k1, (2, 10, 14, 64), jnp.float32).astype(jnp.bfloat16)
    ref = jax.lax.reduce_window(
        xt.astype(jnp.float32), -jnp.inf, jax.lax.max,
        (1, 3, 3, 1), (1, 2, 2, 1), [(0, 0), (1, 1), (1, 1), (0, 0)])
    got = max_pool_3x3_s2(xt).astype(jnp.float32)
    assert jnp.allclose(got, ref), "maxpool mismatch"

    xc = jax.random.normal(k2, (1, 12, 12, 16), jnp.float32).astype(jnp.bfloat16)
    wc = (0.2 * jax.random.normal(k3, (3, 3, 16, 32), jnp.float32)).astype(jnp.bfloat16)
    bv = 0.1 * jax.random.normal(k4, (32,), jnp.float32)

    pc = {"wf": wc, "bias": bv.reshape(1, -1)}
    w2s, spads = _s2d_weight(wc, 1)
    pc["s2d"] = {"wf": w2s, "pads": spads}
    got = conv_bn(xc, pc, stride=2, padding=1, dilation=1, relu=True)
    ref = jax.lax.conv_general_dilated(
        xc.astype(jnp.float32), wc.astype(jnp.float32), (2, 2),
        [(1, 1), (1, 1)], dimension_numbers=dn)
    ref = jnp.maximum(ref + bv.reshape(1, 1, 1, -1), 0.0)
    assert jnp.allclose(got.astype(jnp.float32), ref, atol=0.05, rtol=0.05), \
        "stride-2 space-to-depth conv mismatch"

    got = conv_bn(xc, {"wf": wc, "bias": bv.reshape(1, -1)}, stride=1,
                  padding=2, dilation=2, relu=True)
    ref = jax.lax.conv_general_dilated(
        xc.astype(jnp.float32), wc.astype(jnp.float32), (1, 1),
        [(2, 2), (2, 2)], rhs_dilation=(2, 2), dimension_numbers=dn)
    ref = jnp.maximum(ref + bv.reshape(1, 1, 1, -1), 0.0)
    assert jnp.allclose(got.astype(jnp.float32), ref, atol=0.05, rtol=0.05), \
        "dilated direct conv mismatch"

    w1 = (0.2 * jax.random.normal(k3, (1, 1, 16, 32), jnp.float32)).astype(jnp.bfloat16)
    got = conv_bn(xc[:, :6, :6, :], {"wf": w1, "bias": bv.reshape(1, -1)},
                  stride=1, padding=0, relu=True)
    ref = jnp.maximum(
        jnp.einsum("nhwc,co->nhwo", xc[:, :6, :6, :].astype(jnp.float32),
                   w1[0, 0].astype(jnp.float32)) + bv.reshape(1, 1, 1, -1), 0.0)
    assert jnp.allclose(got.astype(jnp.float32), ref, atol=0.05, rtol=0.05), \
        "1x1 conv mismatch"

    # ---- full backbone forward at small shapes ----
    params = fold_resnet_params(init_resnet50(kp, dilation=True))

    t, b, c, h, w = 2, 1, 3, 64, 64
    tensors = jax.random.normal(kx, (t, b, c, h, w), jnp.float32)
    mask = jax.random.bernoulli(km, 0.1, (t, b, h, w))

    out = resnet_backbone_forward(params, tensors, mask)
    for f, m in out:
        jax.block_until_ready(f)
        jax.block_until_ready(m)

    expect_c = [256, 512, 1024, 2048]          # resnet50 layer output channels
    expect_hw = [(16, 16), (8, 8), (4, 4), (4, 4)]  # layer4 dilated -> layer3 HW
    for (f, m), ec, (eh, ew) in zip(out, expect_c, expect_hw):
        assert f.shape == (t, b, ec, eh, ew), f.shape
        assert m.shape == (t, b, eh, ew), m.shape
        assert f.dtype == jnp.float32 and m.dtype == jnp.bool_
        assert bool(jnp.isfinite(f).all())

    print("KERNEL_OK")
</pallas_src>

<mosaic_0001>
module attributes {stable_mosaic.version = 11 : i64} {
  func.func @_maxpool_kernel(%arg0: i32, %arg1: i32, %arg2: memref<1x10x8x128xbf16, #tpu.memory_space<vmem>>, %arg3: memref<1x2x8x128xbf16, #tpu.memory_space<vmem>>, %arg4: memref<1x5x7x64xbf16, #tpu.memory_space<vmem>>) attributes {dimension_semantics = [#tpu.dimension_semantics<parallel>, #tpu.dimension_semantics<arbitrary>], iteration_bounds = array<i64: 2, 1>, scalar_prefetch = 0 : i64, scratch_operands = 0 : i64, tpu.core_type = #tpu.core_type<tc>, window_params = [{transform_indices = @transform_0, window_bounds = array<i64: 1, 10, 8, 128>}, {transform_indices = @transform_1, window_bounds = array<i64: 1, 2, 8, 128>}, {transform_indices = @transform_2, window_bounds = array<i64: 1, 5, 7, 64>}]} {
    %c0 = arith.constant 0 : index
    %c0_0 = arith.constant 0 : index
    %c0_1 = arith.constant 0 : index
    %c0_2 = arith.constant 0 : index
    %0 = vector.load %arg2[%c0, %c0_0, %c0_1, %c0_2] : memref<1x10x8x128xbf16, #tpu.memory_space<vmem>>, vector<1x10x8x128xbf16>
    %1 = vector.shape_cast %0 : vector<1x10x8x128xbf16> to vector<10x8x128xbf16>
    %c0_3 = arith.constant 0 : index
    %c0_4 = arith.constant 0 : index
    %c0_5 = arith.constant 0 : index
    %c0_6 = arith.constant 0 : index
    %2 = vector.load %arg3[%c0_3, %c0_4, %c0_5, %c0_6] : memref<1x2x8x128xbf16, #tpu.memory_space<vmem>>, vector<1x2x8x128xbf16>
    %3 = vector.shape_cast %2 : vector<1x2x8x128xbf16> to vector<2x8x128xbf16>
    %4 = vector.shape_cast %1 : vector<10x8x128xbf16> to vector<5x2x8x128xbf16>
    %5 = vector.extract_strided_slice %4 {offsets = [0, 0, 0, 0], sizes = [5, 1, 8, 128], strides = [1, 1, 1, 1]} : vector<5x2x8x128xbf16> to vector<5x1x8x128xbf16>
    %6 = vector.shape_cast %5 : vector<5x1x8x128xbf16> to vector<5x8x128xbf16>
    %7 = vector.extract_strided_slice %4 {offsets = [0, 1, 0, 0], sizes = [5, 1, 8, 128], strides = [1, 1, 1, 1]} : vector<5x2x8x128xbf16> to vector<5x1x8x128xbf16>
    %8 = vector.shape_cast %7 : vector<5x1x8x128xbf16> to vector<5x8x128xbf16>
    %9 = vector.extract_strided_slice %3 {offsets = [0, 0, 0], sizes = [1, 8, 128], strides = [1, 1, 1]} : vector<2x8x128xbf16> to vector<1x8x128xbf16>
    %10 = tpu.concatenate %6, %9 in 0 : vector<5x8x128xbf16>, vector<1x8x128xbf16> -> vector<6x8x128xbf16>
    %11 = vector.extract_strided_slice %10 {offsets = [0, 0, 0], sizes = [5, 8, 128], strides = [1, 1, 1]} : vector<6x8x128xbf16> to vector<5x8x128xbf16>
    %12 = arith.maximumf %11, %8 : vector<5x8x128xbf16>
    %13 = vector.extract_strided_slice %10 {offsets = [1, 0, 0], sizes = [5, 8, 128], strides = [1, 1, 1]} : vector<6x8x128xbf16> to vector<5x8x128xbf16>
    %14 = arith.maximumf %12, %13 : vector<5x8x128xbf16>
    %15 = vector.extract_strided_slice %14 {offsets = [0, 0, 0], sizes = [5, 7, 64], strides = [1, 1, 1]} : vector<5x8x128xbf16> to vector<5x7x64xbf16>
    %16 = vector.extract_strided_slice %14 {offsets = [0, 0, 64], sizes = [5, 7, 64], strides = [1, 1, 1]} : vector<5x8x128xbf16> to vector<5x7x64xbf16>
    %17 = vector.extract_strided_slice %14 {offsets = [0, 1, 0], sizes = [5, 7, 64], strides = [1, 1, 1]} : vector<5x8x128xbf16> to vector<5x7x64xbf16>
    %18 = arith.maximumf %15, %16 : vector<5x7x64xbf16>
    %19 = arith.maximumf %18, %17 : vector<5x7x64xbf16>
    %c0_7 = arith.constant 0 : index
    %c0_8 = arith.constant 0 : index
    %c0_9 = arith.constant 0 : index
    %c0_10 = arith.constant 0 : index
    %20 = vector.load %arg4[%c0_7, %c0_8, %c0_9, %c0_10] : memref<1x5x7x64xbf16, #tpu.memory_space<vmem>>, vector<1x5x7x64xbf16>
    %21 = vector.shape_cast %20 : vector<1x5x7x64xbf16> to vector<5x7x64xbf16>
    %22 = vector.shape_cast %19 : vector<5x7x64xbf16> to vector<1x5x7x64xbf16>
    tpu.vector_store %arg4[%c0_7, %c0_8, %c0_9, %c0_10], %22 {strides = array<i32>} : memref<1x5x7x64xbf16, #tpu.memory_space<vmem>>, vector<1x5x7x64xbf16>,
    return
  }
  func.func @transform_0(%arg0: i32, %arg1: i32) -> (i32, i32, i32, i32) {
    %c0_i32 = arith.constant 0 : i32
    %c0_i32_0 = arith.constant 0 : i32
    %c0_i32_1 = arith.constant 0 : i32
    return %arg0, %arg1, %c0_i32, %c0_i32_0 : i32, i32, i32, i32
  }
  func.func @transform_1(%arg0: i32, %arg1: i32) -> (i32, i32, i32, i32) {
    %c1_i32 = arith.constant 1 : i32
    %0 = arith.addi %arg1, %c1_i32 : i32
    %c5_i32 = arith.constant 5 : i32
    %1 = arith.muli %c5_i32, %0 : i32
    %c0_i32 = arith.constant 0 : i32
    %c0_i32_0 = arith.constant 0 : i32
    %c0_i32_1 = arith.constant 0 : i32
    return %arg0, %1, %c0_i32, %c0_i32_0 : i32, i32, i32, i32
  }
  func.func @transform_2(%arg0: i32, %arg1: i32) -> (i32, i32, i32, i32) {
    %c0_i32 = arith.constant 0 : i32
    %c0_i32_0 = arith.constant 0 : i32
    %c0_i32_1 = arith.constant 0 : i32
    return %arg0, %arg1, %c0_i32, %c0_i32_0 : i32, i32, i32, i32
  }
}

</mosaic_0001>

<bundles_post_ra>
// kernel: tpu_custom_call.1
= control target key start
LH: loop header
LB: loop body
LE: loop exit
PB: predicated region body
PF: predicated region fallthrough
CT: control target
= control target key end

     0   :  { %7 = vsyncpa [#allocation3], 0  ;;  %s930_s0 = inlined_call_operand.hbm [shape: bf16[2,12,8,128], index: 0, kind: input, shape index: {}]   ;;  %s931_s1 = inlined_call_operand.hbm [shape: bf16[2,12,8,128], index: 1, kind: input, shape index: {}]   ;;  %s932_s2 = inlined_call_operand.vmem [shape: bf16[2,5,7,64], index: 2, kind: output, shape index: {}]  }
   0x1   :  { %9 = vsyncpa [#allocation3 + $0x1], 0 }
   0x2   :  { %10 = vsyncpa [#allocation5], 0 }
   0x3   :  { %12 = vsyncpa [#allocation5 + $0x1], 0  ;;  %s712_s9 = smov 0   ;;  %s714_s10 = smov 0  }
   0x4   :  { %s716_s11 = smov 0   ;;  %s718_s12 = smov 0  }
   0x5   :  { %s720_s13 = smov 0   ;;  %s722_s14 = smov 0  }
   0x6 LB: > { %s496_s15 = sadd.s32 4294967295, %s690_s14   ;;  %s30_s16 = sadd.s32 1, %s686_s13  ;;  %s690_s14 = sphi %s722_s14, %s18_s14   ;;  %s686_s13 = sphi %s720_s13, %s944_s13   ;;  %s682_s12 = sphi %s718_s12, %s943_s12   ;;  %s678_s11 = sphi %s716_s11, %s942_s11   ;;  %s674_s10 = sphi %s714_s10, %s941_s10   ;;  %s670_s9 = sphi %s712_s9, %s940_s9  }
   0x7   : > { %p32_p0 = scmp.ge.s32.totalorder %s30_s16, 2  ;;  %s39_s17 = sadd.s32 1, %s678_s11 }
   0x8   : > { %p46_p1 = scmp.ne.s32.totalorder %s678_s11, %s674_s10  ;;  %p47_p2 = scmp.eq.s32.totalorder %s690_s14, 0 }
   0x9   : > { %s946_s16 = smov (%p32_p0, %s30_s16), 0  ;;  %p52_p4 = scmp.ne.s32.totalorder %s674_s10, %s670_s9 }
   0xa   : > { %p48_p3 = por %p47_p2, %p46_p1  ;;  %s34_s18 = ssub.s32 %s686_s13, %s946_s16 }
   0xb   : > { %p53_p5 = scmp.eq.s32.totalorder %s496_s15, 0  ;;  %p37_p6 = scmp.eq.s32.totalorder %s34_s18, 0 }
   0xc   : > { %p523_p8 = scmp.lt.s32.totalorder %s690_s14, 2  ;;  %s760_s21 = sand.u32 1, %s678_s11  }
   0xd   : > { %p751_p7 = por %p53_p5, %p52_p4  ;;  %s509_s22 = smul.u32 768, %s686_s13 }
   0xe   : > { %s757_s20 = scalar_select %p37_p6, %s678_s11, %s39_s17  }
   0xf   : > { %s934_s19 = scalar_select %p751_p7, 1, 0 }
  0x10   : > { %s508_s23 = smul.u32 40, %s760_s21  ;;  %s769_s26 = scalar_lea.hbm %s930_s0, %s509_s22 }
  0x11   : > { %p771_p9 = pnand %p523_p8, %p48_p3  ;;  %s137_s30 = scalar_lea.sflag [#allocation3], %s760_s21 }
  0x12   : > { %s140_s28 = scalar_lea.vmem [#allocation2], %s508_s23  ;;  %s575_s3 = scalar_lea.hbm %s769_s26, 640 }
  0x13   : > { %s155_s29 = sshll.u32 %s140_s28, 4  ;;  %p576_p10 = scmp.ne.s32.totalorder %s769_s26, %s575_s3  ;;  %s775_s29 = int_to_ptr.vmem [resolvable:$true] %s155_s29 }
  0x14   : > { %p577_p11 = pneg %p771_p9  ;;  %s580_s6 = scalar_lea.hbm %s930_s0, 1536 }
  0x15   : > { %p581_p0 = scmp.lt.u32.totalorder %s769_s26, %s930_s0  ;;  %p582_p1 = scmp.lt.u32.totalorder %s580_s6, %s575_s3 }
  0x16   : > { %p578_p12 = pnand %p577_p11, %p576_p10  ;;  %p584_p3 = scmp.lt.u32.totalorder %s575_s3, %s769_s26 }
  0x17   : > { %p583_p2 = por %p582_p1, %p581_p0 }
  0x18   : > { %p579_p13 = pneg %p578_p12 }
  0x19   : > { %p585_p4 = por %p584_p3, %p583_p2 }
  0x1b   : > { %p586_p5 = pnand %p585_p4, %p579_p13 }
  0x1d   : > { %589 = shalt.err (!%p586_p5)
}
  0x1e   : > { %s590_s9 = scalar_lea.vmem %s775_s29, 640  ;;  %s692_s15 = smov [#allocation2]  }
  0x1f   : > { %p591_p6 = scmp.ne.s32.totalorder %s775_s29, %s590_s9  ;;  %s595_s17 = sshll.u32 %s692_s15, 4  ;;  %s596_s17 = int_to_ptr.vmem [resolvable:$false] %s595_s17 }
  0x20   : > { %s597_s18 = scalar_lea.vmem %s596_s17, 1280  ;;  %p598_p12 = scmp.lt.s32.totalorder %s775_s29, %s596_s17 }
  0x21   : > { %p593_p8 = pnand %p591_p6, %p577_p11  ;;  %p599_p0 = scmp.lt.s32.totalorder %s597_s18, %s590_s9 }
  0x23   : > { %p594_p10 = pneg %p593_p8  ;;  %p600_p1 = por %p599_p0, %p598_p12 }
  0x25   : > { %p601_p2 = pnand %p600_p1, %p594_p10 }
  0x27   : > { %604 = shalt.err (!%p601_p2)
}
  0x28   : > { %s693_s23 = smov 64   ;;  %s694_s24 = smov 4  }
  0x29   : > { %519 = dma.hbm_to_vmem [thread:$0]  (!%p771_p9), %s769_s26, 640, %s775_s29, %s137_s30, %s693_s23, %s693_s23, %s694_s24  }
  0x2a   : > { %p503_p13 = scmp.ge.s32.totalorder %s690_s14, 1  ;;  %p188_p3 = scmp.lt.s32.totalorder %s690_s14, 3 }
  0x2b   : > { %s501_s25 = sshll.u32 %s760_s21, 3  ;;  %s425_s5 = scalar_lea.hbm %s931_s1, %s509_s22 }
  0x2c   : > { %p811_p4 = pnand %p503_p13, %p188_p3  ;;  %s169_s6 = scalar_lea.vmem [#allocation4], %s501_s25 }
  0x2d   : > { %s180_s7 = sshll.u32 %s169_s6, 4  ;;  %s820_s8 = scalar_lea.hbm %s425_s5, 640  ;;  %s822_s7 = int_to_ptr.vmem [resolvable:$true] %s180_s7 }
  0x2e   : > { %s166_s26 = scalar_lea.sflag [#allocation5], %s760_s21  ;;  %s635_s29 = scalar_lea.hbm %s425_s5, 768 }
  0x2f   : > { %p606_p5 = scmp.ne.s32.totalorder %s820_s8, %s635_s29  ;;  %s610_s22 = scalar_lea.hbm %s931_s1, 1536 }
  0x30   : > { %p611_p10 = scmp.lt.u32.totalorder %s820_s8, %s931_s1  ;;  %p612_p12 = scmp.lt.u32.totalorder %s610_s22, %s635_s29 }
  0x31   : > { %p608_p6 = pnand %p606_p5, %p577_p11  ;;  %p614_p1 = scmp.lt.u32.totalorder %s635_s29, %s820_s8 }
  0x32   : > { %p613_p0 = por %p612_p12, %p611_p10 }
  0x33   : > { %p609_p8 = pneg %p608_p6 }
  0x34   : > { %p615_p2 = por %p614_p1, %p613_p0 }
  0x36   : > { %p616_p13 = pnand %p615_p2, %p609_p8 }
  0x38   : > { %619 = shalt.err (!%p616_p13)
}
  0x39   : > { %s620_s18 = scalar_lea.vmem %s822_s7, 128  ;;  %s695_s25 = smov [#allocation4]  }
  0x3a   : > { %p621_p3 = scmp.ne.s32.totalorder %s822_s7, %s620_s18  ;;  %s625_s3 = sshll.u32 %s695_s25, 4  ;;  %s626_s3 = int_to_ptr.vmem [resolvable:$false] %s625_s3 }
  0x3b   : > { %s627_s4 = scalar_lea.vmem %s626_s3, 256  ;;  %p628_p7 = scmp.lt.s32.totalorder %s822_s7, %s626_s3 }
  0x3c   : > { %p623_p5 = pnand %p621_p3, %p577_p11  ;;  %p629_p10 = scmp.lt.s32.totalorder %s627_s4, %s620_s18 }
  0x3e   : > { %p624_p6 = pneg %p623_p5  ;;  %p630_p12 = por %p629_p10, %p628_p7 }
  0x40   : > { %p631_p0 = pnand %p630_p12, %p624_p6 }
  0x42   : > { %634 = shalt.err (!%p631_p0)
}
  0x43   : > { %522 = dma.hbm_to_vmem [thread:$0]  (!%p771_p9), %s820_s8, 128, %s822_s7, %s166_s26, %s693_s23, %s693_s23, %s694_s24  }
  0x44   : > { %192 = sbr.rel (%p811_p4) target bundleno = 213 (0xd5), region = 28  ;;  %s194_s5 = sand.u32 (!%p811_p4), 1, %s674_s10  }
  0x45   : > { %s510_s6 = smul.u32 (!%p811_p4), 40, %s194_s5  ;;  %s195_s29 = scalar_lea.sflag (!%p811_p4), [#allocation3], %s194_s5 }
  0x46   : > { %p937_p7 = scmp.ne.s32.totalorder (!%p811_p4), %s934_s19, 0 }
  0x47   : > { %s198_s30 = scalar_lea.vmem (!%p811_p4), [#allocation2], %s510_s6 }
  0x4b   : > { %661 = dma.done.wait (%p937_p7), %s195_s29, 640  }
  0x4c   : > { %663 = vsyncadd (%p937_p7), %s195_s29, 4294966656  ;;  %s504_s27 = sshll.u32 %s194_s5, 3  ;;  %s204_s21 = scalar_lea.sflag [#allocation5], %s194_s5 }
  0x4d   : > { %s207_s9 = scalar_lea.vmem [#allocation4], %s504_s27 }
  0x4e   : > { %665 = dma.done.wait (%p937_p7), %s204_s21, 128  }
  0x4f   : > { %667 = vsyncadd (%p937_p7), %s204_s21, 4294967168  ;;  %v255_v0 = vld [vmem:[%s198_s30] sm:$0xf]  ;;  %v256_v1 = vld [vmem:[%s198_s30 + $0x4] sm:$0xf]  ;;  %s696_s23 = smov 64  }
  0x50   : > { %v257_v2 = vld [vmem:[%s198_s30 + $0x8] sm:$0xf]  ;;  %v266_v3 = vmax.bf16 %v256_v1, %v255_v0  ;;  %v259_v4 = vld [vmem:[%s198_s30 + $0x10] sm:$0xf]  ;;  %v260_v5 = vld [vmem:[%s198_s30 + $0x14] sm:$0xf] }
  0x51   : > { %v261_v6 = vld [vmem:[%s198_s30 + $0x18] sm:$0xf]  ;;  %v268_v7 = vmax.bf16 %v260_v5, %v259_v4  ;;  %v258_v8 = vld [vmem:[%s198_s30 + $0xc] sm:$0xf]  ;;  %v262_v9 = vld [vmem:[%s198_s30 + $0x1c] sm:$0xf] }
  0x52   : > { %v263_v10 = vld [vmem:[%s198_s30 + $0x20] sm:$0xf]  ;;  %v271_v11 = vmax.bf16 %v266_v3, %v257_v2  ;;  %v267_v12 = vmax.bf16 %v258_v8, %v257_v2  ;;  %v269_v13 = vmax.bf16 %v262_v9, %v261_v6  ;;  %v264_v14 = vld [vmem:[%s198_s30 + $0x24] sm:$0xf]  ;;  %v265_v19 = vld [vmem:[%s207_s9] sm:$0xf] }
  0x53   : > { %v273_v15 = vmax.bf16 %v268_v7, %v261_v6  ;;  %v270_v17 = vmax.bf16 %v264_v14, %v263_v10  ;;  %p246_p9 = scmp.lt.s32.totalorder %s682_s12, 1  ;;  %vm356_vm0 = vcmask 519168   ;;  %vm357_vm1 = vsmask.f32 3328 }
  0x54   : > { %281 = vrot.lane.b32.xlu0 %v271_v11, %s696_s23  ;;  %v863_v16 = vmax.bf16 %v267_v12, %v259_v4  ;;  %v865_v18 = vmax.bf16 %v269_v13, %v263_v10  ;;  %v302_v21 = vshrl.u32 %v271_v11, 16  ;;  %v305_v22 = vshll.u32 %v271_v11, 16  ;;  %vm885_vm2 = vmand %vm356_vm0, %vm357_vm1 }
  0x55   : > { %285 = vrot.lane.b32.xlu1 %v273_v15, %s696_s23  ;;  %v868_v20 = vmax.bf16 %v270_v17, %v265_v19  ;;  %v320_v23 = vshrl.u32 %v273_v15, 16  ;;  %v323_v24 = vshll.u32 %v273_v15, 16  ;;  %s948_s12 = smov (!%p246_p9, %s682_s12), 1 }
  0x56   : > { %v304_v25 = vrot.slane %v302_v21, 4  ;;  %v307_v26 = vrot.slane %v305_v22, 5  ;;  %v311_v27 = vshrl.u32 %v863_v16, 16  ;;  %v314_v28 = vshll.u32 %v863_v16, 16  ;;  %s511_s19 = smul.u32 20, %s948_s12 }
  0x57   : > { %v322_v29 = vrot.slane %v320_v23, 4  ;;  %v325_v30 = vrot.slane %v323_v24, 5  ;;  %v329_v31 = vshrl.u32 %v865_v18, 16  ;;  %v332_v32 = vshll.u32 %v865_v18, 16 }
  0x58   : > { %283 = vrot.lane.b32.xlu0 %v863_v16, %s696_s23  ;;  %v308_v33 = vor.u32 %v307_v26, %v304_v25  ;;  %v313_v34 = vrot.slane %v311_v27, 4  ;;  %v316_v35 = vrot.slane %v314_v28, 5  ;;  %v338_v36 = vshrl.u32 %v868_v20, 16  ;;  %s883_s7 = scalar_lea.vmem %s932_s2, %s511_s19 }
  0x59   : > { %287 = vrot.lane.b32.xlu1 %v865_v18, %s696_s23  ;;  %v341_v37 = vshll.u32 %v868_v20, 16  ;;  %v326_v38 = vor.u32 %v325_v30, %v322_v29  ;;  %v331_v39 = vrot.slane %v329_v31, 4  ;;  %v334_v40 = vrot.slane %v332_v32, 5  ;;  %v359_v51 = vld [vmem:[%s883_s7] sm:$0xf] }
  0x5a   : > { %v309_v41 = vrot.slane %v308_v33, 4  ;;  %v317_v42 = vor.u32 %v316_v35, %v313_v34  ;;  %v340_v43 = vrot.slane %v338_v36, 4  ;;  %v365_v54 = vld [vmem:[%s883_s7 + $0x8] sm:$0xf]  ;;  %v362_v0 = vld [vmem:[%s883_s7 + $0x4] sm:$0xf] }
  0x5b   : > { %v343_v44 = vrot.slane %v341_v37, 5  ;;  %v327_v46 = vrot.slane %v326_v38, 4  ;;  %v335_v47 = vor.u32 %v334_v40, %v331_v39  ;;  %v368_v3 = vld [vmem:[%s883_s7 + $0xc] sm:$0xf]  ;;  %v371_v10 = vld [vmem:[%s883_s7 + $0x10] sm:$0xf] }
  0x5c   : > { %289 = vrot.lane.b32.xlu0 %v868_v20, %s696_s23  ;;  %v318_v55 = vrot.slane %v317_v42, 4 }
  0x5d   : > { %v344_v56 = vor.u32 %v343_v44, %v340_v43  ;;  %v336_v59 = vrot.slane %v335_v47, 4 }
  0x5f   : > { %v345_v4 = vrot.slane %v344_v56, 4 }
  0xc6   : > { %v282_v45 = vpop.permute.xlu0 %281 }
  0xc7   : > { %v296_v48 = vmax.bf16 %v282_v45, %v271_v11  ;;  %v286_v49 = vpop.permute.xlu1 %285 }
  0xc8   : > { %v298_v52 = vmax.bf16 %v286_v49, %v273_v15 }
  0xc9   : > { %v351_v53 = vmax.bf16 %v309_v41, %v296_v48 }
  0xca   : > { %v353_v57 = vmax.bf16 %v327_v46, %v298_v52  ;;  %v284_v58 = vpop.permute.xlu0 %283 }
  0xcb   : > { %v360_v60 = vsel %vm885_vm2, %v351_v53, %v359_v51  ;;  %v297_v61 = vmax.bf16 %v284_v58, %v863_v16  ;;  %v288_v62 = vpop.permute.xlu1 %287 }
  0xcc   : > { %361 = vst [vmem:[%s883_s7] sm:$0xf] %v360_v60  ;;  %v366_v63 = vsel %vm885_vm2, %v353_v57, %v365_v54  ;;  %v299_v1 = vmax.bf16 %v288_v62, %v865_v18 }
  0xcd   : > { %367 = vst [vmem:[%s883_s7 + $0x8] sm:$0xf] %v366_v63  ;;  %v352_v2 = vmax.bf16 %v318_v55, %v297_v61 }
  0xce   : > { %v354_v5 = vmax.bf16 %v336_v59, %v299_v1  ;;  %v290_v6 = vpop.permute.xlu0 %289 }
  0xcf   : > { %v363_v7 = vsel %vm885_vm2, %v352_v2, %v362_v0  ;;  %v300_v8 = vmax.bf16 %v290_v6, %v868_v20 }
  0xd0   : > { %364 = vst [vmem:[%s883_s7 + $0x4] sm:$0xf] %v363_v7  ;;  %v369_v9 = vsel %vm885_vm2, %v354_v5, %v368_v3 }
  0xd1   : > { %370 = vst [vmem:[%s883_s7 + $0xc] sm:$0xf] %v369_v9  ;;  %v355_v11 = vmax.bf16 %v345_v4, %v300_v8 }
  0xd3   : > { %v372_v12 = vsel %vm885_vm2, %v355_v11, %v371_v10 }
  0xd4   : > { %373 = vst [vmem:[%s883_s7 + $0x10] sm:$0xf] %v372_v12 }
  0xd5 PF: > { %s18_s14 = sadd.s32 1, %s690_s14   ;;  %s940_s9 = smov %s674_s10 }
  0xd6   : > { %p15_p11 = scmp.ge.s32.totalorder %s18_s14, 4   ;;  %s941_s10 = smov %s678_s11 }
  0xd7   : > { %s942_s11 = smov %s757_s20  ;;  %s943_s12 = smov %s686_s13 }
  0xd8   : > { %s944_s13 = smov %s946_s16  ;;  %17 = sbr.rel (!%p15_p11) target bundleno = 6 (0x6), region = 81 }
  0xdf   :  { %404 = vsyncpa [#allocation3], 1 }
  0xe0   :  { %406 = vsyncpa [#allocation3 + $0x1], 1 }
  0xe1   :  { %407 = vsyncpa [#allocation5], 1 }
  0xe2   :  { %409 = vsyncpa [#allocation5 + $0x1], 1 }

</bundles_post_ra>
